<compile_context>
chip_gen: v6e
topology: v6e:2x2x1
jax: 0.10.0
libtpu: 0.0.40
codegen_flags: <defaults>
</compile_context>

<pallas_src>
import functools

import jax
import jax.numpy as jnp
from jax.experimental import pallas as pl
from jax.experimental.pallas import tpu as pltpu

_LANES = 128
_SUBLANES = 8
_MIN_PAD = _LANES * _SUBLANES  # pad flat size to a multiple of 1024 -> rows % 8 == 0


def _dma_copy_kernel(src_hbm, dst_hbm, sem):
    # Identity: forward() returns the parameter unchanged.
    # One HBM -> HBM DMA; no grid, no VMEM staging.
    copy = pltpu.make_async_copy(src_hbm, dst_hbm, sem)
    copy.start()
    copy.wait()


def _hbm_copy(slab: jax.Array) -> jax.Array:
    """Copy a lane-dense (rows, 128) slab with a single HBM->HBM async DMA."""
    nbytes = slab.size * slab.dtype.itemsize
    cost = pl.CostEstimate(flops=0, transcendentals=0, bytes_accessed=2 * nbytes)
    return pl.pallas_call(
        _dma_copy_kernel,
        out_shape=jax.ShapeDtypeStruct(slab.shape, slab.dtype),
        in_specs=[pl.BlockSpec(memory_space=pl.ANY)],
        out_specs=pl.BlockSpec(memory_space=pl.ANY),
        scratch_shapes=[pltpu.SemaphoreType.DMA],
        cost_estimate=cost,
    )(slab)


@jax.jit
def optimization_offsets_forward_slab(offsets_slab: jax.Array) -> jax.Array:
    """Preferred downstream interface: kernel-only path, returns the copied
    lane-dense (rows, 128) slab with no extra reshape/slice HBM pass."""
    return _hbm_copy(offsets_slab)


@functools.partial(jax.jit, static_argnames=("n_v",))
def optimization_offsets_forward(offsets_slab: jax.Array, n_v: int) -> jax.Array:
    """Equivalent of OptimizationOffsets.forward(): returns the (n_v, 3) offsets.

    The (n_v, 3) view is materialized only here, at the API boundary; keep
    consumers on `optimization_offsets_forward_slab` when they can use the
    slab layout directly.
    """
    out_slab = optimization_offsets_forward_slab(offsets_slab)
    return out_slab.reshape(-1)[: n_v * 3].reshape(n_v, 3)


class OptimizationOffsetsPallas:
    """JAX/Pallas mirror of the PyTorch OptimizationOffsets module."""

    def __init__(self, n_v: int = 6890, key: jax.Array | None = None):
        self.n_v = n_v
        n = n_v * 3
        padded = ((n + _MIN_PAD - 1) // _MIN_PAD) * _MIN_PAD
        self._n = n
        self._rows = padded // _LANES

        # PyTorch __init__ uses torch.zeros(n_v, 3); optionally random init so
        # the copy kernel is exercised on non-trivial data.
        if key is None:
            flat = jnp.zeros((n,), dtype=jnp.float32)
        else:
            flat = jax.random.normal(key, (n,), dtype=jnp.float32)

        # Parameter stored lane-dense: (rows, 128) f32, zero-padded tail.
        self.offsets_slab = jnp.pad(flat, (0, padded - n)).reshape(
            self._rows, _LANES
        )

    @property
    def offsets(self) -> jax.Array:
        # Canonical (n_v, 3) view of the parameter (pure layout plumbing).
        return self.offsets_slab.reshape(-1)[: self._n].reshape(self.n_v, 3)

    def forward_slab(self) -> jax.Array:
        # Slab-layout forward (no extra HBM pass) for slab-aware consumers.
        return optimization_offsets_forward_slab(self.offsets_slab)

    def __call__(self) -> jax.Array:
        # PyTorch-contract forward: (n_v, 3) offsets.
        return optimization_offsets_forward(self.offsets_slab, self.n_v)


if __name__ == "__main__":
    key = jax.random.PRNGKey(0)

    # Small shape consistent with the module (n_v vertices x 3 coordinates).
    n_v = 64
    module = OptimizationOffsetsPallas(n_v=n_v, key=key)

    # Kernel-only slab path.
    slab_out = jax.block_until_ready(module.forward_slab())
    assert slab_out.shape == module.offsets_slab.shape
    assert bool(jnp.array_equal(slab_out, module.offsets_slab))

    # API-boundary (n_v, 3) path.
    out = jax.block_until_ready(module())
    assert out.shape == (n_v, 3)
    assert out.dtype == jnp.float32
    assert bool(jnp.array_equal(out, module.offsets))

    # Default module size (6890 vertices, zeros init) — exercises a padding
    # tail (20670 -> 21504 elements) and the zeros initialization path.
    zeros_module = OptimizationOffsetsPallas()
    zeros_out = jax.block_until_ready(zeros_module())
    assert zeros_out.shape == (6890, 3)
    assert bool(jnp.all(zeros_out == 0.0))
    assert bool(jnp.array_equal(zeros_out, zeros_module.offsets))

    print("KERNEL_OK")
</pallas_src>

<mosaic_0001>
module attributes {stable_mosaic.version = 11 : i64} {
  func.func @_dma_copy_kernel(%arg0: memref<8x128xf32, #tpu.memory_space<any>>, %arg1: memref<8x128xf32, #tpu.memory_space<any>>, %arg2: memref<!tpu.dma_semaphore, #tpu.memory_space<semaphore_mem>>) attributes {dimension_semantics = [], scalar_prefetch = 0 : i64, scratch_operands = 1 : i64, tpu.core_type = #tpu.core_type<tc>} {
    tpu.enqueue_dma source(%arg0 : memref<8x128xf32, #tpu.memory_space<any>>) target(%arg1 : memref<8x128xf32, #tpu.memory_space<any>>) target_semaphore(%arg2 : memref<!tpu.dma_semaphore, #tpu.memory_space<semaphore_mem>>)
    tpu.wait_dma2 semaphore(%arg2 : memref<!tpu.dma_semaphore, #tpu.memory_space<semaphore_mem>>) src(%arg0 : memref<8x128xf32, #tpu.memory_space<any>>) dst(%arg1 : memref<8x128xf32, #tpu.memory_space<any>>)
    return
  }
}

</mosaic_0001>

<bundles_post_ra>
// kernel: optimization_offsets_forward_slab.1
= control target key start
LH: loop header
LB: loop body
LE: loop exit
PB: predicated region body
PF: predicated region fallthrough
CT: control target
= control target key end

     0   :  { %s28_s6 = smov [#allocation2]   ;;  %s29_s7 = smov 131072   ;;  %s47_s0 = inlined_call_operand.hbm [shape: f32[8,128], index: 0, kind: input, shape index: {}]   ;;  %s48_s1 = inlined_call_operand.hbm [shape: f32[8,128], index: 1, kind: output, shape index: {}]  }
   0x1   :  { %s30_s8 = smov 0  }
   0x2   :  { %12 = dma.general %s47_s0, 128, %s48_s1, %s28_s6, %s29_s7, [#allocation4], %s30_s8, 0  }
   0x3   :  { %26 = dma.done.wait [#allocation2], 128 }
   0x4   :  { %27 = vsyncadd [#allocation2], 4294967168 }
   0x5   :  { %16 = vsyncmov [#allocation2] }
   0x8   :  { %s17_s13 = vpop.sfrf %16 }
   0x9   :  { %p22_p0 = scmp.ne.s32.totalorder %s17_s13, 0 }
   0xb   :  { %21 = shalt.err (%p22_p0)  }

</bundles_post_ra>
